<compile_context>
chip_gen: v7x
topology: tpu7x:2x2x1
jax: 0.10.0
libtpu: 0.0.40
codegen_flags: <defaults>
</compile_context>

<pallas_src>
import jax
import jax.numpy as jnp
from jax.experimental import pallas as pl
from jax.experimental.pallas import tpu as pltpu

HIDDEN = 16            # conv1 output features
NUM_CLASSES = 2        # conv2 output features
LANE = 128             # lane width; final-output class dim padded to this
VMEM_LIMIT_BYTES = 32 * 1024 * 1024


def _round_up(x, m):
    return ((x + m - 1) // m) * m


def _pick_tile(n):
    # Biggest square A tile (bf16, double-buffered) that doesn't over-pad tiny
    # graphs; 512 tiles sit ~85% of HBM roofline for the mem-bound A stream.
    for t in (512, 256, 128):
        if n >= t:
            return t
    return 128


# ----------------------------------------------------------------------------
# Prologue kernel:  XW = X @ W1   (stored bf16, consumed by the layer-1 A pass)
# ----------------------------------------------------------------------------
def _xw_kernel(x_ref, w1_ref, xw_ref):
    xw_ref[...] = jnp.dot(
        x_ref[...], w1_ref[...], preferred_element_type=jnp.float32
    ).astype(xw_ref.dtype)


# ----------------------------------------------------------------------------
# Layer 1 kernel:  H = relu( A @ XW + b1 )
#   grid = (rows, cols);  acc (tm, 16) f32 scratch;  A/XW/H in bf16.
# ----------------------------------------------------------------------------
def _layer1_kernel(a_ref, xw_ref, b1_ref, h_ref, acc_ref):
    k = pl.program_id(1)

    @pl.when(k == 0)
    def _():
        acc_ref[...] = jnp.zeros_like(acc_ref)

    acc_ref[...] += jnp.dot(
        a_ref[...], xw_ref[...], preferred_element_type=jnp.float32
    )

    @pl.when(k == pl.num_programs(1) - 1)
    def _():
        h = jnp.maximum(acc_ref[...] + b1_ref[...], 0.0)   # bias + ReLU in f32
        h_ref[...] = h.astype(h_ref.dtype)                 # store H as bf16


# ----------------------------------------------------------------------------
# Layer 2 kernel:  out = log_softmax( A @ (H W2) + b2 , axis=1 )
#   Output block is (tm, 128) lane-dense; only the first NUM_CLASSES lanes are
#   real (W2/b2 zero-padded); padded lanes are masked out of the softmax.
#   The (tk,16)@(16,128) dot is tiny filler hidden under the A_hat DMA; fusing
#   it here keeps the streamed operand at 16 lanes (H) instead of 128 (HW).
# ----------------------------------------------------------------------------
def _layer2_kernel(a_ref, h_ref, w2_ref, b2_ref, o_ref, acc_ref):
    k = pl.program_id(1)

    @pl.when(k == 0)
    def _():
        acc_ref[...] = jnp.zeros_like(acc_ref)

    hw = jnp.dot(h_ref[...], w2_ref[...], preferred_element_type=jnp.float32)
    acc_ref[...] += jnp.dot(
        a_ref[...], hw.astype(jnp.bfloat16), preferred_element_type=jnp.float32
    )

    @pl.when(k == pl.num_programs(1) - 1)
    def _():
        z = acc_ref[...] + b2_ref[...]                              # (tm, 128) f32
        col = jax.lax.broadcasted_iota(jnp.int32, z.shape, 1)
        mask = col < NUM_CLASSES
        zm = jnp.where(mask, z, -1e30)                              # kill padded lanes
        m = jnp.max(zm, axis=1, keepdims=True)
        s = zm - m
        p = jnp.where(mask, jnp.exp(s), 0.0)
        lse = jnp.log(jnp.sum(p, axis=1, keepdims=True))
        o_ref[...] = jnp.where(mask, s - lse, 0.0)


# ----------------------------------------------------------------------------
# Wrapper: padding, bf16 casts, three pallas_calls (prologue + two tiled layers)
# ----------------------------------------------------------------------------
def gnn_forward(a_hat, x, w1, b1, w2, b2):
    n, f_in = x.shape
    tile = _pick_tile(n)
    tm = tk = tile
    npad = _round_up(n, tile)

    # Zero-pad node dimension; padded A rows/cols and X rows are zero, so they
    # contribute nothing to real rows and are sliced off at the end.
    a_p = jnp.zeros((npad, npad), jnp.float32).at[:n, :n].set(a_hat)
    a_p = a_p.astype(jnp.bfloat16)
    x_p = jnp.zeros((npad, f_in), jnp.float32).at[:n, :].set(x).astype(jnp.bfloat16)

    w1_b = w1.astype(jnp.bfloat16)                                  # (F, 16)
    b1_f = b1.reshape(1, HIDDEN).astype(jnp.float32)                # (1, 16)

    # Pad class dim of W2/b2 to LANE for a lane-dense output block.
    w2_p = (
        jnp.zeros((HIDDEN, LANE), jnp.float32)
        .at[:, :NUM_CLASSES]
        .set(w2)
        .astype(jnp.bfloat16)
    )
    b2_p = jnp.zeros((1, LANE), jnp.float32).at[:, :NUM_CLASSES].set(b2.reshape(1, -1))

    grid = (npad // tm, npad // tk)
    cparams = pltpu.CompilerParams(
        dimension_semantics=("parallel", "arbitrary"),
        vmem_limit_bytes=VMEM_LIMIT_BYTES,
    )

    # ---- Prologue: XW = X @ W1, bf16 (npad, 16) ----
    xw = pl.pallas_call(
        _xw_kernel,
        out_shape=jax.ShapeDtypeStruct((npad, HIDDEN), jnp.bfloat16),
        grid_spec=pltpu.PrefetchScalarGridSpec(
            num_scalar_prefetch=0,
            grid=(npad // tm,),
            in_specs=[
                pl.BlockSpec((tm, f_in), lambda i: (i, 0)),         # X row block
                pl.BlockSpec((f_in, HIDDEN), lambda i: (0, 0)),     # W1 (full)
            ],
            out_specs=pl.BlockSpec((tm, HIDDEN), lambda i: (i, 0)),
        ),
        compiler_params=pltpu.CompilerParams(
            dimension_semantics=("parallel",),
            vmem_limit_bytes=VMEM_LIMIT_BYTES,
        ),
    )(x_p, w1_b)

    # ---- Layer 1: H = relu(A @ XW + b1), stored as bf16 (npad, 16) ----
    h = pl.pallas_call(
        _layer1_kernel,
        out_shape=jax.ShapeDtypeStruct((npad, HIDDEN), jnp.bfloat16),
        grid_spec=pltpu.PrefetchScalarGridSpec(
            num_scalar_prefetch=0,
            grid=grid,
            in_specs=[
                pl.BlockSpec((tm, tk), lambda i, k: (i, k)),        # A tile
                pl.BlockSpec((tk, HIDDEN), lambda i, k: (k, 0)),    # XW rows for col block
                pl.BlockSpec((1, HIDDEN), lambda i, k: (0, 0)),     # b1 (full)
            ],
            out_specs=pl.BlockSpec((tm, HIDDEN), lambda i, k: (i, 0)),
            scratch_shapes=[pltpu.VMEM((tm, HIDDEN), jnp.float32)],
        ),
        compiler_params=cparams,
    )(a_p, xw, b1_f)

    # ---- Layer 2: out = log_softmax(A @ (H W2) + b2), lane-dense (npad, 128) ----
    out_p = pl.pallas_call(
        _layer2_kernel,
        out_shape=jax.ShapeDtypeStruct((npad, LANE), jnp.float32),
        grid_spec=pltpu.PrefetchScalarGridSpec(
            num_scalar_prefetch=0,
            grid=grid,
            in_specs=[
                pl.BlockSpec((tm, tk), lambda i, k: (i, k)),        # A tile
                pl.BlockSpec((tk, HIDDEN), lambda i, k: (k, 0)),    # H rows for col block
                pl.BlockSpec((HIDDEN, LANE), lambda i, k: (0, 0)),  # W2 padded (full)
                pl.BlockSpec((1, LANE), lambda i, k: (0, 0)),       # b2 padded (full)
            ],
            out_specs=pl.BlockSpec((tm, LANE), lambda i, k: (i, 0)),
            scratch_shapes=[pltpu.VMEM((tm, LANE), jnp.float32)],
        ),
        compiler_params=cparams,
    )(a_p, h, w2_p, b2_p)

    return out_p[:n, :NUM_CLASSES]


# ----------------------------------------------------------------------------
# Glue: dense GCN-normalized adjacency (add_self_loops=True, normalize=True)
# ----------------------------------------------------------------------------
def build_norm_adj(edge_index, edge_weight, num_nodes):
    src = edge_index[0]
    dst = edge_index[1]
    loop = jnp.arange(num_nodes, dtype=edge_index.dtype)
    src = jnp.concatenate([src, loop])
    dst = jnp.concatenate([dst, loop])
    w = jnp.concatenate(
        [edge_weight.astype(jnp.float32), jnp.ones((num_nodes,), jnp.float32)]
    )
    deg = jnp.zeros((num_nodes,), jnp.float32).at[dst].add(w)
    dinv = jnp.where(deg > 0, 1.0 / jnp.sqrt(deg), 0.0)
    norm = dinv[src] * w * dinv[dst]
    a_hat = jnp.zeros((num_nodes, num_nodes), jnp.float32).at[dst, src].add(norm)
    return a_hat


# ----------------------------------------------------------------------------
# Deterministic parameter init (glorot-uniform weights, zero bias, like GCNConv)
# ----------------------------------------------------------------------------
def init_params(key, num_node_features, hidden=HIDDEN, num_classes=NUM_CLASSES):
    k1, k2 = jax.random.split(key)

    def glorot(k, fan_in, fan_out):
        limit = jnp.sqrt(6.0 / (fan_in + fan_out))
        return jax.random.uniform(
            k, (fan_in, fan_out), jnp.float32, minval=-limit, maxval=limit
        )

    w1 = glorot(k1, num_node_features, hidden)
    b1 = jnp.zeros((1, hidden), jnp.float32)
    w2 = glorot(k2, hidden, num_classes)
    b2 = jnp.zeros((1, num_classes), jnp.float32)
    return w1, b1, w2, b2


# ----------------------------------------------------------------------------
# Pure-JAX (f32) reference for a sanity check
# ----------------------------------------------------------------------------
def gnn_reference(a_hat, x, w1, b1, w2, b2):
    h = jnp.maximum(a_hat @ (x @ w1) + b1, 0.0)
    z = a_hat @ (h @ w2) + b2
    return jax.nn.log_softmax(z, axis=1)


if __name__ == "__main__":
    key = jax.random.PRNGKey(0)
    k_x, k_src, k_dst, k_w, k_param = jax.random.split(key, 5)

    num_nodes = 8
    num_node_features = 4
    num_edges = 16

    x = jax.random.normal(k_x, (num_nodes, num_node_features), jnp.float32)
    edge_src = jax.random.randint(k_src, (num_edges,), 0, num_nodes, jnp.int32)
    edge_dst = jax.random.randint(k_dst, (num_edges,), 0, num_nodes, jnp.int32)
    edge_index = jnp.stack([edge_src, edge_dst], axis=0)          # (2, E)
    edge_weight = jax.random.uniform(k_w, (num_edges,), jnp.float32, 0.1, 1.0)

    w1, b1, w2, b2 = init_params(k_param, num_node_features)
    a_hat = build_norm_adj(edge_index, edge_weight, num_nodes)

    fwd = jax.jit(gnn_forward)
    out = fwd(a_hat, x, w1, b1, w2, b2)
    out = jax.block_until_ready(out)

    ref = gnn_reference(a_hat, x, w1, b1, w2, b2)
    assert out.shape == (num_nodes, NUM_CLASSES)
    assert bool(jnp.all(jnp.isfinite(out)))
    # bf16 A/X/H streaming (f32 accumulation) => relaxed tolerance vs f32 ref.
    assert jnp.allclose(out, ref, atol=5e-2, rtol=5e-2), "mismatch vs reference"

    print("KERNEL_OK")
</pallas_src>

<mosaic_0001>
module attributes {stable_mosaic.version = 11 : i64} {
  func.func @_xw_kernel(%arg0: i32, %arg1: memref<128x4xbf16, #tpu.memory_space<vmem>>, %arg2: memref<4x16xbf16, #tpu.memory_space<vmem>>, %arg3: memref<128x16xbf16, #tpu.memory_space<vmem>>) attributes {dimension_semantics = [#tpu.dimension_semantics<parallel>], iteration_bounds = array<i64: 1>, scalar_prefetch = 0 : i64, scratch_operands = 0 : i64, tpu.core_type = #tpu.core_type<tc>, window_params = [{transform_indices = @transform_0, window_bounds = array<i64: 128, 4>}, {pipeline_mode = #tpu.pipeline_mode<synchronous>, transform_indices = @transform_1, window_bounds = array<i64: 4, 16>}, {transform_indices = @transform_2, window_bounds = array<i64: 128, 16>}]} {
    %c0 = arith.constant 0 : index
    %c0_0 = arith.constant 0 : index
    %0 = vector.load %arg1[%c0, %c0_0] : memref<128x4xbf16, #tpu.memory_space<vmem>>, vector<128x4xbf16>
    %c0_1 = arith.constant 0 : index
    %c0_2 = arith.constant 0 : index
    %1 = vector.load %arg2[%c0_1, %c0_2] : memref<4x16xbf16, #tpu.memory_space<vmem>>, vector<4x16xbf16>
    %cst = arith.constant dense<0.000000e+00> : vector<128x16xf32>
    %2 = tpu.matmul %0, %1, %cst {dimension_numbers = #tpu.dot_dimension_numbers<[1], [0], [0], [1], [0, 0, 1, 1], [], []>} : vector<128x4xbf16>, vector<4x16xbf16>, vector<128x16xf32> -> vector<128x16xf32>
    %3 = arith.truncf %2 : vector<128x16xf32> to vector<128x16xbf16>
    %c0_3 = arith.constant 0 : index
    %c0_4 = arith.constant 0 : index
    %4 = vector.load %arg3[%c0_3, %c0_4] : memref<128x16xbf16, #tpu.memory_space<vmem>>, vector<128x16xbf16>
    tpu.vector_store %arg3[%c0_3, %c0_4], %3 {strides = array<i32>} : memref<128x16xbf16, #tpu.memory_space<vmem>>, vector<128x16xbf16>,
    return
  }
  func.func @transform_0(%arg0: i32) -> (i32, i32) {
    %c0_i32 = arith.constant 0 : i32
    %c0_i32_0 = arith.constant 0 : i32
    return %arg0, %c0_i32 : i32, i32
  }
  func.func @transform_1(%arg0: i32) -> (i32, i32) {
    %c0_i32 = arith.constant 0 : i32
    %c0_i32_0 = arith.constant 0 : i32
    %c0_i32_1 = arith.constant 0 : i32
    return %c0_i32, %c0_i32_0 : i32, i32
  }
  func.func @transform_2(%arg0: i32) -> (i32, i32) {
    %c0_i32 = arith.constant 0 : i32
    %c0_i32_0 = arith.constant 0 : i32
    return %arg0, %c0_i32 : i32, i32
  }
}

module attributes {stable_mosaic.version = 11 : i64} {
  func.func @_layer1_kernel(%arg0: i32, %arg1: i32, %arg2: memref<128x128xbf16, #tpu.memory_space<vmem>>, %arg3: memref<128x16xbf16, #tpu.memory_space<vmem>>, %arg4: memref<1x16xf32, #tpu.memory_space<vmem>>, %arg5: memref<128x16xbf16, #tpu.memory_space<vmem>>, %arg6: memref<128x16xf32, #tpu.memory_space<vmem>>) attributes {dimension_semantics = [#tpu.dimension_semantics<parallel>, #tpu.dimension_semantics<arbitrary>], iteration_bounds = array<i64: 1, 1>, scalar_prefetch = 0 : i64, scratch_operands = 1 : i64, tpu.core_type = #tpu.core_type<tc>, window_params = [{transform_indices = @transform_0, window_bounds = array<i64: 128, 128>}, {transform_indices = @transform_1, window_bounds = array<i64: 128, 16>}, {pipeline_mode = #tpu.pipeline_mode<synchronous>, transform_indices = @transform_2, window_bounds = array<i64: 1, 16>}, {transform_indices = @transform_3, window_bounds = array<i64: 128, 16>}]} {
    %c0_i32 = arith.constant 0 : i32
    %0 = arith.cmpi eq, %arg1, %c0_i32 : i32
    %1 = arith.extui %0 : i1 to i32
    %c0_i32_0 = arith.constant 0 : i32
    %2 = arith.cmpi ne, %1, %c0_i32_0 : i32
    scf.if %2 {
      %cst_10 = arith.constant 0.000000e+00 : f32
      %12 = vector.broadcast %cst_10 : f32 to vector<128x16xf32>
      %c0_11 = arith.constant 0 : index
      %c0_12 = arith.constant 0 : index
      %13 = vector.load %arg6[%c0_11, %c0_12] : memref<128x16xf32, #tpu.memory_space<vmem>>, vector<128x16xf32>
      tpu.vector_store %arg6[%c0_11, %c0_12], %12 {strides = array<i32>} : memref<128x16xf32, #tpu.memory_space<vmem>>, vector<128x16xf32>,
    } else {
    }
    %c0 = arith.constant 0 : index
    %c0_1 = arith.constant 0 : index
    %3 = vector.load %arg6[%c0, %c0_1] : memref<128x16xf32, #tpu.memory_space<vmem>>, vector<128x16xf32>
    %c0_2 = arith.constant 0 : index
    %c0_3 = arith.constant 0 : index
    %4 = vector.load %arg2[%c0_2, %c0_3] : memref<128x128xbf16, #tpu.memory_space<vmem>>, vector<128x128xbf16>
    %c0_4 = arith.constant 0 : index
    %c0_5 = arith.constant 0 : index
    %5 = vector.load %arg3[%c0_4, %c0_5] : memref<128x16xbf16, #tpu.memory_space<vmem>>, vector<128x16xbf16>
    %cst = arith.constant dense<0.000000e+00> : vector<128x16xf32>
    %6 = tpu.matmul %4, %5, %cst {dimension_numbers = #tpu.dot_dimension_numbers<[1], [0], [0], [1], [0, 0, 1, 1], [], []>} : vector<128x128xbf16>, vector<128x16xbf16>, vector<128x16xf32> -> vector<128x16xf32>
    %7 = arith.addf %3, %6 : vector<128x16xf32>
    %c0_6 = arith.constant 0 : index
    %c0_7 = arith.constant 0 : index
    %8 = vector.load %arg6[%c0_6, %c0_7] : memref<128x16xf32, #tpu.memory_space<vmem>>, vector<128x16xf32>
    tpu.vector_store %arg6[%c0_6, %c0_7], %7 {strides = array<i32>} : memref<128x16xf32, #tpu.memory_space<vmem>>, vector<128x16xf32>,
    %c0_i32_8 = arith.constant 0 : i32
    %9 = arith.cmpi eq, %arg1, %c0_i32_8 : i32
    %10 = arith.extui %9 : i1 to i32
    %c0_i32_9 = arith.constant 0 : i32
    %11 = arith.cmpi ne, %10, %c0_i32_9 : i32
    scf.if %11 {
      %c0_10 = arith.constant 0 : index
      %c0_11 = arith.constant 0 : index
      %12 = vector.load %arg6[%c0_10, %c0_11] : memref<128x16xf32, #tpu.memory_space<vmem>>, vector<128x16xf32>
      %c0_12 = arith.constant 0 : index
      %c0_13 = arith.constant 0 : index
      %13 = vector.load %arg4[%c0_12, %c0_13] : memref<1x16xf32, #tpu.memory_space<vmem>>, vector<1x16xf32>
      %14 = vector.broadcast %13 : vector<1x16xf32> to vector<128x16xf32>
      %15 = arith.addf %12, %14 : vector<128x16xf32>
      %cst_14 = arith.constant 0.000000e+00 : f32
      %16 = vector.broadcast %cst_14 : f32 to vector<128x16xf32>
      %17 = arith.maximumf %15, %16 : vector<128x16xf32>
      %18 = arith.truncf %17 : vector<128x16xf32> to vector<128x16xbf16>
      %c0_15 = arith.constant 0 : index
      %c0_16 = arith.constant 0 : index
      %19 = vector.load %arg5[%c0_15, %c0_16] : memref<128x16xbf16, #tpu.memory_space<vmem>>, vector<128x16xbf16>
      tpu.vector_store %arg5[%c0_15, %c0_16], %18 {strides = array<i32>} : memref<128x16xbf16, #tpu.memory_space<vmem>>, vector<128x16xbf16>,
    } else {
    }
    return
  }
  func.func @transform_0(%arg0: i32, %arg1: i32) -> (i32, i32) {
    %c0_i32 = arith.constant 0 : i32
    return %arg0, %arg1 : i32, i32
  }
  func.func @transform_1(%arg0: i32, %arg1: i32) -> (i32, i32) {
    %c0_i32 = arith.constant 0 : i32
    %c0_i32_0 = arith.constant 0 : i32
    return %arg1, %c0_i32 : i32, i32
  }
  func.func @transform_2(%arg0: i32, %arg1: i32) -> (i32, i32) {
    %c0_i32 = arith.constant 0 : i32
    %c0_i32_0 = arith.constant 0 : i32
    %c0_i32_1 = arith.constant 0 : i32
    return %c0_i32, %c0_i32_0 : i32, i32
  }
  func.func @transform_3(%arg0: i32, %arg1: i32) -> (i32, i32) {
    %c0_i32 = arith.constant 0 : i32
    %c0_i32_0 = arith.constant 0 : i32
    return %arg0, %c0_i32 : i32, i32
  }
}

module attributes {stable_mosaic.version = 11 : i64} {
  func.func @_layer2_kernel(%arg0: i32, %arg1: i32, %arg2: memref<128x128xbf16, #tpu.memory_space<vmem>>, %arg3: memref<128x16xbf16, #tpu.memory_space<vmem>>, %arg4: memref<16x128xbf16, #tpu.memory_space<vmem>>, %arg5: memref<1x128xf32, #tpu.memory_space<vmem>>, %arg6: memref<128x128xf32, #tpu.memory_space<vmem>>, %arg7: memref<128x128xf32, #tpu.memory_space<vmem>>) attributes {dimension_semantics = [#tpu.dimension_semantics<parallel>, #tpu.dimension_semantics<arbitrary>], iteration_bounds = array<i64: 1, 1>, scalar_prefetch = 0 : i64, scratch_operands = 1 : i64, tpu.core_type = #tpu.core_type<tc>, window_params = [{transform_indices = @transform_0, window_bounds = array<i64: 128, 128>}, {transform_indices = @transform_1, window_bounds = array<i64: 128, 16>}, {pipeline_mode = #tpu.pipeline_mode<synchronous>, transform_indices = @transform_2, window_bounds = array<i64: 16, 128>}, {pipeline_mode = #tpu.pipeline_mode<synchronous>, transform_indices = @transform_3, window_bounds = array<i64: 1, 128>}, {transform_indices = @transform_4, window_bounds = array<i64: 128, 128>}]} {
    %c0_i32 = arith.constant 0 : i32
    %0 = arith.cmpi eq, %arg1, %c0_i32 : i32
    %1 = arith.extui %0 : i1 to i32
    %c0_i32_0 = arith.constant 0 : i32
    %2 = arith.cmpi ne, %1, %c0_i32_0 : i32
    scf.if %2 {
      %cst_13 = arith.constant 0.000000e+00 : f32
      %15 = vector.broadcast %cst_13 : f32 to vector<128x128xf32>
      %c0_14 = arith.constant 0 : index
      %c0_15 = arith.constant 0 : index
      %16 = vector.load %arg7[%c0_14, %c0_15] : memref<128x128xf32, #tpu.memory_space<vmem>>, vector<128x128xf32>
      tpu.vector_store %arg7[%c0_14, %c0_15], %15 {strides = array<i32>} : memref<128x128xf32, #tpu.memory_space<vmem>>, vector<128x128xf32>,
    } else {
    }
    %c0 = arith.constant 0 : index
    %c0_1 = arith.constant 0 : index
    %3 = vector.load %arg3[%c0, %c0_1] : memref<128x16xbf16, #tpu.memory_space<vmem>>, vector<128x16xbf16>
    %c0_2 = arith.constant 0 : index
    %c0_3 = arith.constant 0 : index
    %4 = vector.load %arg4[%c0_2, %c0_3] : memref<16x128xbf16, #tpu.memory_space<vmem>>, vector<16x128xbf16>
    %cst = arith.constant dense<0.000000e+00> : vector<128x128xf32>
    %5 = tpu.matmul %3, %4, %cst {dimension_numbers = #tpu.dot_dimension_numbers<[1], [0], [0], [1], [0, 0, 1, 1], [], []>} : vector<128x16xbf16>, vector<16x128xbf16>, vector<128x128xf32> -> vector<128x128xf32>
    %c0_4 = arith.constant 0 : index
    %c0_5 = arith.constant 0 : index
    %6 = vector.load %arg7[%c0_4, %c0_5] : memref<128x128xf32, #tpu.memory_space<vmem>>, vector<128x128xf32>
    %c0_6 = arith.constant 0 : index
    %c0_7 = arith.constant 0 : index
    %7 = vector.load %arg2[%c0_6, %c0_7] : memref<128x128xbf16, #tpu.memory_space<vmem>>, vector<128x128xbf16>
    %8 = arith.truncf %5 : vector<128x128xf32> to vector<128x128xbf16>
    %cst_8 = arith.constant dense<0.000000e+00> : vector<128x128xf32>
    %9 = tpu.matmul %7, %8, %cst_8 {dimension_numbers = #tpu.dot_dimension_numbers<[1], [0], [0], [1], [0, 0, 1, 1], [], []>} : vector<128x128xbf16>, vector<128x128xbf16>, vector<128x128xf32> -> vector<128x128xf32>
    %10 = arith.addf %6, %9 : vector<128x128xf32>
    %c0_9 = arith.constant 0 : index
    %c0_10 = arith.constant 0 : index
    %11 = vector.load %arg7[%c0_9, %c0_10] : memref<128x128xf32, #tpu.memory_space<vmem>>, vector<128x128xf32>
    tpu.vector_store %arg7[%c0_9, %c0_10], %10 {strides = array<i32>} : memref<128x128xf32, #tpu.memory_space<vmem>>, vector<128x128xf32>,
    %c0_i32_11 = arith.constant 0 : i32
    %12 = arith.cmpi eq, %arg1, %c0_i32_11 : i32
    %13 = arith.extui %12 : i1 to i32
    %c0_i32_12 = arith.constant 0 : i32
    %14 = arith.cmpi ne, %13, %c0_i32_12 : i32
    scf.if %14 {
      %c0_13 = arith.constant 0 : index
      %c0_14 = arith.constant 0 : index
      %15 = vector.load %arg7[%c0_13, %c0_14] : memref<128x128xf32, #tpu.memory_space<vmem>>, vector<128x128xf32>
      %c0_15 = arith.constant 0 : index
      %c0_16 = arith.constant 0 : index
      %16 = vector.load %arg5[%c0_15, %c0_16] : memref<1x128xf32, #tpu.memory_space<vmem>>, vector<1x128xf32>
      %17 = vector.broadcast %16 : vector<1x128xf32> to vector<128x128xf32>
      %18 = arith.addf %15, %17 : vector<128x128xf32>
      %19 = tpu.iota {dimensions = array<i32: 1>} : vector<128x128xi32>
      %c2_i32 = arith.constant 2 : i32
      %20 = vector.broadcast %c2_i32 : i32 to vector<128x128xi32>
      %21 = arith.cmpi slt, %19, %20 : vector<128x128xi32>
      %cst_17 = arith.constant -1.000000e+30 : f32
      %22 = vector.broadcast %cst_17 : f32 to vector<128x128xf32>
      %23 = arith.select %21, %18, %22 : vector<128x128xi1>, vector<128x128xf32>
      %cst_18 = arith.constant dense<0xFF800000> : vector<128xf32>
      %24 = vector.multi_reduction <maximumf>, %23, %cst_18 [1] : vector<128x128xf32> to vector<128xf32>
      %25 = vector.shape_cast %24 : vector<128xf32> to vector<128x1xf32>
      %26 = vector.broadcast %25 : vector<128x1xf32> to vector<128x128xf32>
      %27 = arith.subf %23, %26 : vector<128x128xf32>
      %28 = math.exp %27 : vector<128x128xf32>
      %cst_19 = arith.constant 0.000000e+00 : f32
      %29 = vector.broadcast %cst_19 : f32 to vector<128x128xf32>
      %30 = arith.select %21, %28, %29 : vector<128x128xi1>, vector<128x128xf32>
      %cst_20 = arith.constant dense<0.000000e+00> : vector<128xf32>
      %31 = vector.multi_reduction <add>, %30, %cst_20 [1] : vector<128x128xf32> to vector<128xf32>
      %32 = vector.shape_cast %31 : vector<128xf32> to vector<128x1xf32>
      %33 = math.log %32 : vector<128x1xf32>
      %34 = vector.broadcast %33 : vector<128x1xf32> to vector<128x128xf32>
      %35 = arith.subf %27, %34 : vector<128x128xf32>
      %cst_21 = arith.constant 0.000000e+00 : f32
      %36 = vector.broadcast %cst_21 : f32 to vector<128x128xf32>
      %37 = arith.select %21, %35, %36 : vector<128x128xi1>, vector<128x128xf32>
      %c0_22 = arith.constant 0 : index
      %c0_23 = arith.constant 0 : index
      %38 = vector.load %arg6[%c0_22, %c0_23] : memref<128x128xf32, #tpu.memory_space<vmem>>, vector<128x128xf32>
      tpu.vector_store %arg6[%c0_22, %c0_23], %37 {strides = array<i32>} : memref<128x128xf32, #tpu.memory_space<vmem>>, vector<128x128xf32>,
    } else {
    }
    return
  }
  func.func @transform_0(%arg0: i32, %arg1: i32) -> (i32, i32) {
    %c0_i32 = arith.constant 0 : i32
    return %arg0, %arg1 : i32, i32
  }
  func.func @transform_1(%arg0: i32, %arg1: i32) -> (i32, i32) {
    %c0_i32 = arith.constant 0 : i32
    %c0_i32_0 = arith.constant 0 : i32
    return %arg1, %c0_i32 : i32, i32
  }
  func.func @transform_2(%arg0: i32, %arg1: i32) -> (i32, i32) {
    %c0_i32 = arith.constant 0 : i32
    %c0_i32_0 = arith.constant 0 : i32
    %c0_i32_1 = arith.constant 0 : i32
    return %c0_i32, %c0_i32_0 : i32, i32
  }
  func.func @transform_3(%arg0: i32, %arg1: i32) -> (i32, i32) {
    %c0_i32 = arith.constant 0 : i32
    %c0_i32_0 = arith.constant 0 : i32
    %c0_i32_1 = arith.constant 0 : i32
    return %c0_i32, %c0_i32_0 : i32, i32
  }
  func.func @transform_4(%arg0: i32, %arg1: i32) -> (i32, i32) {
    %c0_i32 = arith.constant 0 : i32
    %c0_i32_0 = arith.constant 0 : i32
    return %arg0, %c0_i32 : i32, i32
  }
}

</mosaic_0001>

<bundles_post_ra>
// kernel: gnn_forward.4
= control target key start
LH: loop header
LB: loop body
LE: loop exit
PB: predicated region body
PF: predicated region fallthrough
CT: control target
= control target key end

     0   :  { %vm19_vm0 = vcmask 130048   ;;  %v583_v1 = vmov 0.0   ;;  %vm432_vm1 = vcmask 125952   ;;  %s769_s1 = inlined_call_operand.vmem [shape: bf16[128,16], index: 1, kind: input, shape index: {}]   ;;  %s770_s0 = inlined_call_operand.vmem [shape: bf16[128,128], index: 0, kind: input, shape index: {}]   ;;  %s771_s2 = inlined_call_operand.vmem [shape: f32[1,16], index: 2, kind: input, shape index: {}]   ;;  %s772_s3 = inlined_call_operand.vmem [shape: bf16[128,16], index: 3, kind: output, shape index: {}]  }
   0x1   :  { %v567_v0 = vld [vmem:[%s769_s1] sm:$0xff]   ;;  %22 = vst.msk [vmem:[#allocation2 + $0x10] sm:$0xff] %vm19_vm0, %v583_v1  ;;  %20 = vst.msk [vmem:[#allocation2] sm:$0xff] %vm19_vm0, %v583_v1  ;;  %v568_v2 = vld [vmem:[%s769_s1 + $0x8] sm:$0xff]  }
   0x2   :  { %21 = vst.msk [vmem:[#allocation2 + $0x8] sm:$0xff] %vm19_vm0, %v583_v1  ;;  %23 = vst.msk [vmem:[#allocation2 + $0x18] sm:$0xff] %vm19_vm0, %v583_v1  ;;  %518 = vmatprep.subr.bf16.mxu0 %v567_v0  ;;  %550 = vmatprep.subr.bf16.mxu1 %v567_v0  ;;  %v569_v3 = vld [vmem:[%s769_s1 + $0x10] sm:$0xff]   ;;  %v570_v4 = vld [vmem:[%s769_s1 + $0x18] sm:$0xff]  }
   0x3   :  { %24 = vst.msk [vmem:[#allocation2 + $0x20] sm:$0xff] %vm19_vm0, %v583_v1  ;;  %25 = vst.msk [vmem:[#allocation2 + $0x28] sm:$0xff] %vm19_vm0, %v583_v1  ;;  %519 = vmatpush3.bf16.msra.mxu0 %v567_v0  ;;  %558 = vmatpush3.bf16.msra.mxu1 %v567_v0  ;;  %v575_v5 = vld [vmem:[%s770_s0] sm:$0xff]   ;;  %v572_v8 = vld [vmem:[%s769_s1 + $0x28] sm:$0xff]  }
   0x4   :  { %26 = vst.msk [vmem:[#allocation2 + $0x30] sm:$0xff] %vm19_vm0, %v583_v1  ;;  %27 = vst.msk [vmem:[#allocation2 + $0x38] sm:$0xff] %vm19_vm0, %v583_v1  ;;  %520 = vmatprep.subr.bf16.mxu0 %v568_v2  ;;  %551 = vmatprep.subr.bf16.mxu1 %v568_v2  ;;  %v576_v6 = vld [vmem:[%s770_s0 + $0x20] sm:$0xff]   ;;  %v573_v9 = vld [vmem:[%s769_s1 + $0x30] sm:$0xff]  }
   0x5   :  { %28 = vst.msk [vmem:[#allocation2 + $0x40] sm:$0xff] %vm19_vm0, %v583_v1  ;;  %29 = vst.msk [vmem:[#allocation2 + $0x48] sm:$0xff] %vm19_vm0, %v583_v1  ;;  %534 = vmatprep.mubr.bf16.mxu0 %v575_v5  ;;  %v571_v7 = vld [vmem:[%s769_s1 + $0x20] sm:$0xff]   ;;  %542 = vmatprep.mubr.bf16.mxu1 %v576_v6  ;;  %v574_v10 = vld [vmem:[%s769_s1 + $0x38] sm:$0xff]  }
   0x6   :  { %30 = vst.msk [vmem:[#allocation2 + $0x50] sm:$0xff] %vm19_vm0, %v583_v1  ;;  %31 = vst.msk [vmem:[#allocation2 + $0x58] sm:$0xff] %vm19_vm0, %v583_v1  ;;  %v577_v11 = vld [vmem:[%s770_s0 + $0x8] sm:$0xff]   ;;  %v579_v13 = vld [vmem:[%s770_s0 + $0x10] sm:$0xff]  }
   0x7   :  { %32 = vst.msk [vmem:[#allocation2 + $0x60] sm:$0xff] %vm19_vm0, %v583_v1  ;;  %33 = vst.msk [vmem:[#allocation2 + $0x68] sm:$0xff] %vm19_vm0, %v583_v1  ;;  %521 = vmatpush3.bf16.msra.mxu0 %v568_v2  ;;  %559 = vmatpush3.bf16.msra.mxu1 %v568_v2  ;;  %v578_v12 = vld [vmem:[%s770_s0 + $0x28] sm:$0xff]   ;;  %v580_v14 = vld [vmem:[%s770_s0 + $0x30] sm:$0xff]  }
   0x8   :  { %34 = vst.msk [vmem:[#allocation2 + $0x70] sm:$0xff] %vm19_vm0, %v583_v1  ;;  %35 = vst.msk [vmem:[#allocation2 + $0x78] sm:$0xff] %vm19_vm0, %v583_v1  ;;  %522 = vmatprep.subr.bf16.mxu0 %v569_v3  ;;  %552 = vmatprep.subr.bf16.mxu1 %v569_v3  ;;  %v581_v15 = vld [vmem:[%s770_s0 + $0x18] sm:$0xff]   ;;  %v38_v17 = vld [vmem:[#allocation2 + $0x10] sm:$0xff] }
   0x9   :  { %v582_v16 = vld [vmem:[%s770_s0 + $0x38] sm:$0xff]   ;;  %v36_v19 = vld [vmem:[#allocation2] sm:$0xff]  ;;  %v37_v29 = vld [vmem:[#allocation2 + $0x8] sm:$0xff] }
   0xa   :  { %v39_v23 = vld [vmem:[#allocation2 + $0x18] sm:$0xff]  ;;  %v40_v43 = vld [vmem:[#allocation2 + $0x20] sm:$0xff]  ;;  %v41_v54 = vld [vmem:[#allocation2 + $0x28] sm:$0xff] }
   0xb   :  { %523 = vmatpush3.bf16.msra.mxu0 %v569_v3  ;;  %560 = vmatpush3.bf16.msra.mxu1 %v569_v3  ;;  %v42_v41 = vld [vmem:[#allocation2 + $0x30] sm:$0xff]  ;;  %v679_v45 = vld [vmem:[%s771_s2] ss:$0 sm:$0xff]  ;;  %v43_v48 = vld [vmem:[#allocation2 + $0x38] sm:$0xff] }
   0xc   :  { %524 = vmatprep.subr.bf16.mxu0 %v570_v4  ;;  %553 = vmatprep.subr.bf16.mxu1 %v570_v4  ;;  %v44_v20 = vld [vmem:[#allocation2 + $0x40] sm:$0xff]  ;;  %v45_v30 = vld [vmem:[#allocation2 + $0x48] sm:$0xff] }
   0xd   :  { %v46_v18 = vld [vmem:[#allocation2 + $0x50] sm:$0xff]  ;;  %v47_v24 = vld [vmem:[#allocation2 + $0x58] sm:$0xff] }
   0xe   :  { %v48_v44 = vld [vmem:[#allocation2 + $0x60] sm:$0xff]  ;;  %v49_v55 = vld [vmem:[#allocation2 + $0x68] sm:$0xff] }
   0xf   :  { %525 = vmatpush3.bf16.msra.mxu0 %v570_v4  ;;  %561 = vmatpush3.bf16.msra.mxu1 %v570_v4  ;;  %v50_v42 = vld [vmem:[#allocation2 + $0x70] sm:$0xff]  ;;  %v51_v49 = vld [vmem:[#allocation2 + $0x78] sm:$0xff] }
  0x10   :  { %526 = vmatprep.subr.bf16.mxu0 %v571_v7  ;;  %554 = vmatprep.subr.bf16.mxu1 %v571_v7 }
  0x13   :  { %527 = vmatpush3.bf16.msra.mxu0 %v571_v7  ;;  %562 = vmatpush3.bf16.msra.mxu1 %v571_v7 }
  0x14   :  { %528 = vmatprep.subr.bf16.mxu0 %v572_v8  ;;  %555 = vmatprep.subr.bf16.mxu1 %v572_v8 }
  0x17   :  { %529 = vmatpush3.bf16.msra.mxu0 %v572_v8  ;;  %563 = vmatpush3.bf16.msra.mxu1 %v572_v8 }
  0x18   :  { %530 = vmatprep.subr.bf16.mxu0 %v573_v9  ;;  %556 = vmatprep.subr.bf16.mxu1 %v573_v9 }
  0x1b   :  { %531 = vmatpush3.bf16.msra.mxu0 %v573_v9  ;;  %564 = vmatpush3.bf16.msra.mxu1 %v573_v9 }
  0x1c   :  { %532 = vmatprep.subr.bf16.mxu0 %v574_v10  ;;  %557 = vmatprep.subr.bf16.mxu1 %v574_v10 }
  0x1f   :  { %533 = vmatpush3.bf16.msra.mxu0 %v574_v10  ;;  %565 = vmatpush3.bf16.msra.mxu1 %v574_v10 }
  0x22   :  { %535 = vmatmul.mubr.bf16.vlgmr.msra.gmra.mrb[0].mxu0 %v577_v11  ;;  %543 = vmatmul.mubr.bf16.vlgmr.msra.gmra.mrb[0].mxu1 %v578_v12 }
  0x23   :  { %538 = vmatprep.mubr.bf16.mxu0 %v579_v13  ;;  %546 = vmatprep.mubr.bf16.mxu1 %v580_v14 }
  0x2a   :  { %539 = vmatmul.mubr.bf16.gmra.mrb[4].mxu0 %v581_v15  ;;  %547 = vmatmul.mubr.bf16.gmra.mrb[4].mxu1 %v582_v16 }
  0xf5   :  { %v536_v21 = vpop.f32.mrb[0].mxu0  ;;  %v544_v22 = vpop.f32.mrb[0].mxu1 }
  0xf6   :  { %v279_v25 = vadd.f32 %v536_v21, %v38_v17  ;;  %v287_v26 = vadd.f32 %v544_v22, %v46_v18  ;;  %v214_v27 = vpop.f32.mrb[1].mxu0  ;;  %v246_v28 = vpop.f32.mrb[1].mxu1 }
  0xf7   :  { %v277_v31 = vadd.f32 %v214_v27, %v36_v19  ;;  %v285_v32 = vadd.f32 %v246_v28, %v44_v20  ;;  %v537_v33 = vpop.f32.mrb[2].mxu0  ;;  %v545_v34 = vpop.f32.mrb[2].mxu1 }
  0xf8   :  { %296 = vst.msk [vmem:[#allocation2 + $0x10] sm:$0xff] %vm19_vm0, %v279_v25  ;;  %304 = vst.msk [vmem:[#allocation2 + $0x50] sm:$0xff] %vm19_vm0, %v287_v26  ;;  %v280_v35 = vadd.f32 %v537_v33, %v39_v23  ;;  %v288_v36 = vadd.f32 %v545_v34, %v47_v24  ;;  %v217_v37 = vpop.f32.mrb[3].mxu0  ;;  %v249_v38 = vpop.f32.mrb[3].mxu1 }
  0xf9   :  { %294 = vst.msk [vmem:[#allocation2] sm:$0xff] %vm19_vm0, %v277_v31  ;;  %302 = vst.msk [vmem:[#allocation2 + $0x40] sm:$0xff] %vm19_vm0, %v285_v32  ;;  %v278_v39 = vadd.f32 %v217_v37, %v37_v29  ;;  %v286_v40 = vadd.f32 %v249_v38, %v45_v30 }
  0xfa   :  { %297 = vst.msk [vmem:[#allocation2 + $0x18] sm:$0xff] %vm19_vm0, %v280_v35  ;;  %305 = vst.msk [vmem:[#allocation2 + $0x58] sm:$0xff] %vm19_vm0, %v288_v36 }
  0xfb   :  { %295 = vst.msk [vmem:[#allocation2 + $0x8] sm:$0xff] %vm19_vm0, %v278_v39  ;;  %303 = vst.msk [vmem:[#allocation2 + $0x48] sm:$0xff] %vm19_vm0, %v286_v40 }
  0xfd   :  { %v540_v46 = vpop.f32.mrb[4].mxu0  ;;  %v548_v47 = vpop.f32.mrb[4].mxu1 }
  0xfe   :  { %v283_v50 = vadd.f32 %v540_v46, %v42_v41  ;;  %v291_v51 = vadd.f32 %v548_v47, %v50_v42  ;;  %v230_v52 = vpop.f32.mrb[5].mxu0  ;;  %v262_v53 = vpop.f32.mrb[5].mxu1 }
  0xff   :  { %v315_v56 = vld [vmem:[#allocation2 + $0x10] sm:$0xff]  ;;  %v281_v58 = vadd.f32 %v230_v52, %v40_v43  ;;  %v289_v59 = vadd.f32 %v262_v53, %v48_v44  ;;  %v541_v60 = vpop.f32.mrb[6].mxu0  ;;  %v549_v61 = vpop.f32.mrb[6].mxu1 }
 0x100   :  { %v323_v57 = vld [vmem:[#allocation2 + $0x50] sm:$0xff]  ;;  %v338_v62 = vadd.f32 %v679_v45, %v315_v56  ;;  %v313_v0 = vld [vmem:[#allocation2] sm:$0xff]  ;;  %300 = vst.msk [vmem:[#allocation2 + $0x30] sm:$0xff] %vm19_vm0, %v283_v50  ;;  %308 = vst.msk [vmem:[#allocation2 + $0x70] sm:$0xff] %vm19_vm0, %v291_v51  ;;  %v284_v2 = vadd.f32 %v541_v60, %v43_v48  ;;  %v292_v3 = vadd.f32 %v549_v61, %v51_v49  ;;  %v233_v4 = vpop.f32.mrb[7].mxu0  ;;  %v265_v5 = vpop.f32.mrb[7].mxu1 }
 0x101   :  { %v346_v63 = vadd.f32 %v679_v45, %v323_v57  ;;  %v321_v1 = vld [vmem:[#allocation2 + $0x40] sm:$0xff]  ;;  %v336_v6 = vadd.f32 %v679_v45, %v313_v0  ;;  %v316_v8 = vld [vmem:[#allocation2 + $0x18] sm:$0xff]  ;;  %298 = vst.msk [vmem:[#allocation2 + $0x20] sm:$0xff] %vm19_vm0, %v281_v58  ;;  %306 = vst.msk [vmem:[#allocation2 + $0x60] sm:$0xff] %vm19_vm0, %v289_v59  ;;  %v282_v10 = vadd.f32 %v233_v4, %v41_v54 }
 0x102   :  { %v344_v7 = vadd.f32 %v679_v45, %v321_v1  ;;  %v324_v9 = vld [vmem:[#allocation2 + $0x58] sm:$0xff]  ;;  %v290_v11 = vadd.f32 %v265_v5, %v49_v55  ;;  %v354_v12 = vmax.f32 %v338_v62, 0.0  ;;  %v339_v14 = vadd.f32 %v679_v45, %v316_v8  ;;  %v314_v16 = vld [vmem:[#allocation2 + $0x8] sm:$0xff]  ;;  %301 = vst.msk [vmem:[#allocation2 + $0x38] sm:$0xff] %vm19_vm0, %v284_v2  ;;  %309 = vst.msk [vmem:[#allocation2 + $0x78] sm:$0xff] %vm19_vm0, %v292_v3 }
 0x103   :  { %v362_v13 = vmax.f32 %v346_v63, 0.0  ;;  %v347_v15 = vadd.f32 %v679_v45, %v324_v9  ;;  %v322_v17 = vld [vmem:[#allocation2 + $0x48] sm:$0xff]  ;;  %v352_v18 = vmax.f32 %v336_v6, 0.0  ;;  %v337_v20 = vadd.f32 %v679_v45, %v314_v16  ;;  %299 = vst.msk [vmem:[#allocation2 + $0x28] sm:$0xff] %vm19_vm0, %v282_v10 }
 0x104   :  { %v360_v19 = vmax.f32 %v344_v7, 0.0  ;;  %v345_v21 = vadd.f32 %v679_v45, %v322_v17  ;;  %307 = vst.msk [vmem:[#allocation2 + $0x68] sm:$0xff] %vm19_vm0, %v290_v11  ;;  %v488_v22 = vpack.c.bf16 %v354_v12, %v354_v12  ;;  %v355_v24 = vmax.f32 %v339_v14, 0.0 }
 0x105   :  { %v496_v23 = vpack.c.bf16 %v362_v13, %v362_v13  ;;  %v363_v25 = vmax.f32 %v347_v15, 0.0  ;;  %v486_v26 = vpack.c.bf16 %v352_v18, %v352_v18  ;;  %v353_v28 = vmax.f32 %v337_v20, 0.0 }
 0x106   :  { %v494_v27 = vpack.c.bf16 %v360_v19, %v360_v19  ;;  %v361_v29 = vmax.f32 %v345_v21, 0.0  ;;  %435 = vst.msk [vmem:[%s772_s3 + $0x8] sm:$0xf] %vm432_vm1, %v488_v22  ;;  %v489_v30 = vpack.c.bf16 %v355_v24, %v355_v24 }
 0x107   :  { %443 = vst.msk [vmem:[%s772_s3 + $0x28] sm:$0xf] %vm432_vm1, %v496_v23  ;;  %v497_v31 = vpack.c.bf16 %v363_v25, %v363_v25  ;;  %433 = vst.msk [vmem:[%s772_s3] sm:$0xf] %vm432_vm1, %v486_v26  ;;  %v487_v32 = vpack.c.bf16 %v353_v28, %v353_v28  ;;  %v319_v34 = vld [vmem:[#allocation2 + $0x30] sm:$0xff] }
 0x108   :  { %441 = vst.msk [vmem:[%s772_s3 + $0x20] sm:$0xf] %vm432_vm1, %v494_v27  ;;  %v495_v33 = vpack.c.bf16 %v361_v29, %v361_v29  ;;  %v327_v35 = vld [vmem:[#allocation2 + $0x70] sm:$0xff]  ;;  %436 = vst.msk [vmem:[%s772_s3 + $0xc] sm:$0xf] %vm432_vm1, %v489_v30  ;;  %v342_v36 = vadd.f32 %v679_v45, %v319_v34  ;;  %v317_v38 = vld [vmem:[#allocation2 + $0x20] sm:$0xff] }
 0x109   :  { %444 = vst.msk [vmem:[%s772_s3 + $0x2c] sm:$0xf] %vm432_vm1, %v497_v31  ;;  %v350_v37 = vadd.f32 %v679_v45, %v327_v35  ;;  %v325_v39 = vld [vmem:[#allocation2 + $0x60] sm:$0xff]  ;;  %434 = vst.msk [vmem:[%s772_s3 + $0x4] sm:$0xf] %vm432_vm1, %v487_v32  ;;  %v340_v40 = vadd.f32 %v679_v45, %v317_v38  ;;  %v320_v42 = vld [vmem:[#allocation2 + $0x38] sm:$0xff] }
 0x10a   :  { %442 = vst.msk [vmem:[%s772_s3 + $0x24] sm:$0xf] %vm432_vm1, %v495_v33  ;;  %v348_v41 = vadd.f32 %v679_v45, %v325_v39  ;;  %v328_v43 = vld [vmem:[#allocation2 + $0x78] sm:$0xff]  ;;  %v358_v44 = vmax.f32 %v342_v36, 0.0  ;;  %v343_v47 = vadd.f32 %v679_v45, %v320_v42  ;;  %v318_v49 = vld [vmem:[#allocation2 + $0x28] sm:$0xff] }
 0x10b   :  { %v366_v46 = vmax.f32 %v350_v37, 0.0  ;;  %v351_v48 = vadd.f32 %v679_v45, %v328_v43  ;;  %v326_v50 = vld [vmem:[#allocation2 + $0x68] sm:$0xff]  ;;  %v356_v51 = vmax.f32 %v340_v40, 0.0  ;;  %v341_v53 = vadd.f32 %v679_v45, %v318_v49 }
 0x10c   :  { %v364_v52 = vmax.f32 %v348_v41, 0.0  ;;  %v349_v54 = vadd.f32 %v679_v45, %v326_v50  ;;  %v492_v55 = vpack.c.bf16 %v358_v44, %v358_v44  ;;  %v359_v57 = vmax.f32 %v343_v47, 0.0 }
 0x10d   :  { %v500_v56 = vpack.c.bf16 %v366_v46, %v366_v46  ;;  %v367_v58 = vmax.f32 %v351_v48, 0.0  ;;  %v490_v59 = vpack.c.bf16 %v356_v51, %v356_v51  ;;  %v357_v61 = vmax.f32 %v341_v53, 0.0 }
 0x10e   :  { %v498_v60 = vpack.c.bf16 %v364_v52, %v364_v52  ;;  %v365_v62 = vmax.f32 %v349_v54, 0.0  ;;  %439 = vst.msk [vmem:[%s772_s3 + $0x18] sm:$0xf] %vm432_vm1, %v492_v55  ;;  %v493_v63 = vpack.c.bf16 %v359_v57, %v359_v57 }
 0x10f   :  { %447 = vst.msk [vmem:[%s772_s3 + $0x38] sm:$0xf] %vm432_vm1, %v500_v56  ;;  %v501_v45 = vpack.c.bf16 %v367_v58, %v367_v58  ;;  %437 = vst.msk [vmem:[%s772_s3 + $0x10] sm:$0xf] %vm432_vm1, %v490_v59  ;;  %v491_v0 = vpack.c.bf16 %v357_v61, %v357_v61 }
 0x110   :  { %445 = vst.msk [vmem:[%s772_s3 + $0x30] sm:$0xf] %vm432_vm1, %v498_v60  ;;  %v499_v1 = vpack.c.bf16 %v365_v62, %v365_v62  ;;  %440 = vst.msk [vmem:[%s772_s3 + $0x1c] sm:$0xf] %vm432_vm1, %v493_v63 }
 0x111   :  { %448 = vst.msk [vmem:[%s772_s3 + $0x3c] sm:$0xf] %vm432_vm1, %v501_v45  ;;  %438 = vst.msk [vmem:[%s772_s3 + $0x14] sm:$0xf] %vm432_vm1, %v491_v0 }
 0x112   :  { %446 = vst.msk [vmem:[%s772_s3 + $0x34] sm:$0xf] %vm432_vm1, %v499_v1 }

// kernel: gnn_forward.3
= control target key start
LH: loop header
LB: loop body
LE: loop exit
PB: predicated region body
PF: predicated region fallthrough
CT: control target
= control target key end

     0   :  { %vm94_vm0 = vcmask 1041408   ;;  %vm69_vm1 = vcmask 31744   ;;  %vm259_vm2 = vcmask 125952   ;;  %s481_s1 = inlined_call_operand.vmem [shape: bf16[4,16], index: 1, kind: input, shape index: {}]   ;;  %s482_s0 = inlined_call_operand.vmem [shape: bf16[128,4], index: 0, kind: input, shape index: {}]   ;;  %s483_s2 = inlined_call_operand.vmem [shape: bf16[128,16], index: 2, kind: output, shape index: {}]  }
   0x1   :  { %v28_v0 = vld [vmem:[%s481_s1] sm:$0x3]  ;;  %v361_v4 = vld [vmem:[%s482_s0 + $0x8] sm:$0xff]   ;;  %v363_v6 = vld [vmem:[%s482_s0 + $0x10] sm:$0xff]  }
   0x2   :  { %357 = vmatprep.subr.msk.bf16.mxu0 %vm94_vm0, %v28_v0  ;;  %358 = vmatprep.subr.msk.bf16.mxu1 %vm94_vm0, %v28_v0  ;;  %v96_v1 = vsel %vm94_vm0, %v28_v0, 0  ;;  %v359_v2 = vld [vmem:[%s482_s0] sm:$0xff]   ;;  %v362_v5 = vld [vmem:[%s482_s0 + $0x28] sm:$0xff]   ;;  %v364_v7 = vld [vmem:[%s482_s0 + $0x30] sm:$0xff]  }
   0x3   :  { %338 = vmatpush3.bf16.msra.mxu0 %v96_v1  ;;  %356 = vmatpush3.bf16.msra.mxu1 %v96_v1  ;;  %v360_v3 = vld [vmem:[%s482_s0 + $0x20] sm:$0xff]   ;;  %v365_v8 = vld [vmem:[%s482_s0 + $0x18] sm:$0xff]  }
   0x4   :  { %339 = vmatprep.mubr.msk.bf16.mxu0 %vm69_vm1, %v359_v2  ;;  %347 = vmatprep.mubr.msk.bf16.mxu1 %vm69_vm1, %v360_v3  ;;  %v366_v9 = vld [vmem:[%s482_s0 + $0x38] sm:$0xff]  }
   0x6   :  { %340 = vmatmul.mubr.msk.bf16.vlgmr.msra.gmra.mrb[0].mxu0 %vm69_vm1, %v361_v4  ;;  %348 = vmatmul.mubr.msk.bf16.vlgmr.msra.gmra.mrb[0].mxu1 %vm69_vm1, %v362_v5 }
   0x7   :  { %343 = vmatprep.mubr.msk.bf16.mxu0 %vm69_vm1, %v363_v6  ;;  %351 = vmatprep.mubr.msk.bf16.mxu1 %vm69_vm1, %v364_v7 }
   0xe   :  { %344 = vmatmul.mubr.msk.bf16.gmra.mrb[4].mxu0 %vm69_vm1, %v365_v8  ;;  %352 = vmatmul.mubr.msk.bf16.gmra.mrb[4].mxu1 %vm69_vm1, %v366_v9 }
  0xd9   :  { %v341_v10 = vpop.f32.mrb[0].mxu0  ;;  %v349_v12 = vpop.f32.mrb[0].mxu1 }
  0xda   :  { %v314_v11 = vpack.c.bf16 %v341_v10, %v341_v10  ;;  %v132_v13 = vpop.f32.mrb[1].mxu0  ;;  %v322_v14 = vpack.c.bf16 %v349_v12, %v349_v12  ;;  %v164_v16 = vpop.f32.mrb[1].mxu1 }
  0xdb   :  { %v312_v15 = vpack.c.bf16 %v132_v13, %v132_v13  ;;  %v342_v17 = vpop.f32.mrb[2].mxu0  ;;  %v320_v18 = vpack.c.bf16 %v164_v16, %v164_v16  ;;  %v350_v20 = vpop.f32.mrb[2].mxu1 }
  0xdc   :  { %262 = vst.msk [vmem:[%s483_s2 + $0x8] sm:$0xf] %vm259_vm2, %v314_v11  ;;  %v315_v19 = vpack.c.bf16 %v342_v17, %v342_v17  ;;  %v135_v21 = vpop.f32.mrb[3].mxu0  ;;  %270 = vst.msk [vmem:[%s483_s2 + $0x28] sm:$0xf] %vm259_vm2, %v322_v14  ;;  %v323_v22 = vpack.c.bf16 %v350_v20, %v350_v20  ;;  %v167_v24 = vpop.f32.mrb[3].mxu1 }
  0xdd   :  { %260 = vst.msk [vmem:[%s483_s2] sm:$0xf] %vm259_vm2, %v312_v15  ;;  %v313_v23 = vpack.c.bf16 %v135_v21, %v135_v21  ;;  %268 = vst.msk [vmem:[%s483_s2 + $0x20] sm:$0xf] %vm259_vm2, %v320_v18  ;;  %v321_v25 = vpack.c.bf16 %v167_v24, %v167_v24 }
  0xde   :  { %263 = vst.msk [vmem:[%s483_s2 + $0xc] sm:$0xf] %vm259_vm2, %v315_v19  ;;  %271 = vst.msk [vmem:[%s483_s2 + $0x2c] sm:$0xf] %vm259_vm2, %v323_v22 }
  0xdf   :  { %261 = vst.msk [vmem:[%s483_s2 + $0x4] sm:$0xf] %vm259_vm2, %v313_v23  ;;  %269 = vst.msk [vmem:[%s483_s2 + $0x24] sm:$0xf] %vm259_vm2, %v321_v25 }
  0xe1   :  { %v345_v26 = vpop.f32.mrb[4].mxu0  ;;  %v353_v28 = vpop.f32.mrb[4].mxu1 }
  0xe2   :  { %v318_v27 = vpack.c.bf16 %v345_v26, %v345_v26  ;;  %v148_v29 = vpop.f32.mrb[5].mxu0  ;;  %v326_v30 = vpack.c.bf16 %v353_v28, %v353_v28  ;;  %v180_v32 = vpop.f32.mrb[5].mxu1 }
  0xe3   :  { %v316_v31 = vpack.c.bf16 %v148_v29, %v148_v29  ;;  %v346_v33 = vpop.f32.mrb[6].mxu0  ;;  %v324_v34 = vpack.c.bf16 %v180_v32, %v180_v32  ;;  %v354_v36 = vpop.f32.mrb[6].mxu1 }
  0xe4   :  { %266 = vst.msk [vmem:[%s483_s2 + $0x18] sm:$0xf] %vm259_vm2, %v318_v27  ;;  %v319_v35 = vpack.c.bf16 %v346_v33, %v346_v33  ;;  %v151_v37 = vpop.f32.mrb[7].mxu0  ;;  %274 = vst.msk [vmem:[%s483_s2 + $0x38] sm:$0xf] %vm259_vm2, %v326_v30  ;;  %v327_v38 = vpack.c.bf16 %v354_v36, %v354_v36  ;;  %v183_v40 = vpop.f32.mrb[7].mxu1 }
  0xe5   :  { %264 = vst.msk [vmem:[%s483_s2 + $0x10] sm:$0xf] %vm259_vm2, %v316_v31  ;;  %v317_v39 = vpack.c.bf16 %v151_v37, %v151_v37  ;;  %272 = vst.msk [vmem:[%s483_s2 + $0x30] sm:$0xf] %vm259_vm2, %v324_v34  ;;  %v325_v41 = vpack.c.bf16 %v183_v40, %v183_v40 }
  0xe6   :  { %267 = vst.msk [vmem:[%s483_s2 + $0x1c] sm:$0xf] %vm259_vm2, %v319_v35  ;;  %275 = vst.msk [vmem:[%s483_s2 + $0x3c] sm:$0xf] %vm259_vm2, %v327_v38 }
  0xe7   :  { %265 = vst.msk [vmem:[%s483_s2 + $0x14] sm:$0xf] %vm259_vm2, %v317_v39  ;;  %273 = vst.msk [vmem:[%s483_s2 + $0x34] sm:$0xf] %vm259_vm2, %v325_v41 }

// kernel: gnn_forward.5
= control target key start
LH: loop header
LB: loop body
LE: loop exit
PB: predicated region body
PF: predicated region fallthrough
CT: control target
= control target key end

     0   :  { %vm102_vm0 = vcmask 130048   ;;  %v483_v41 = vlaneseq  ;;  %s1226_s2 = inlined_call_operand.vmem [shape: bf16[16,128], index: 2, kind: input, shape index: {}]   ;;  %s1227_s1 = inlined_call_operand.vmem [shape: bf16[128,16], index: 1, kind: input, shape index: {}]   ;;  %s1228_s0 = inlined_call_operand.vmem [shape: bf16[128,128], index: 0, kind: input, shape index: {}]   ;;  %s1229_s3 = inlined_call_operand.vmem [shape: f32[1,128], index: 3, kind: input, shape index: {}]   ;;  %s1230_s4 = inlined_call_operand.vmem [shape: f32[128,128], index: 4, kind: output, shape index: {}]  }
   0x1   :  { %v831_v0 = vld [vmem:[%s1226_s2] sm:$0xff]   ;;  %v833_v2 = vld [vmem:[%s1227_s1 + $0x8] sm:$0xff]   ;;  %v834_v3 = vld [vmem:[%s1227_s1 + $0x10] sm:$0xff]  }
   0x2   :  { %v832_v1 = vld [vmem:[%s1227_s1] sm:$0xff]   ;;  %765 = vmatprep.subr.bf16.mxu0 %v831_v0  ;;  %v835_v4 = vld [vmem:[%s1227_s1 + $0x18] sm:$0xff]   ;;  %v837_v6 = vld [vmem:[%s1227_s1 + $0x28] sm:$0xff]   ;;  %v996_v42 = vand.u32 127, %v483_v41 }
   0x3   :  { %766 = vmatpush3.bf16.msra.mxu0 %v831_v0  ;;  %767 = vmatprep.mubr.msk.bf16.mxu0 %vm102_vm0, %v832_v1  ;;  %v836_v5 = vld [vmem:[%s1227_s1 + $0x20] sm:$0xff]   ;;  %v838_v7 = vld [vmem:[%s1227_s1 + $0x30] sm:$0xff]   ;;  %v839_v8 = vld [vmem:[%s1227_s1 + $0x38] sm:$0xff]  }
   0x4   :  { %v840_v9 = vld [vmem:[%s1228_s0] sm:$0xff]   ;;  %v841_v10 = vld [vmem:[%s1228_s0 + $0x10] sm:$0xff]   ;;  %v842_v35 = vld [vmem:[%s1228_s0 + $0x8] sm:$0xff]   ;;  %vm485_vm1 = vcmp.lt.s32.totalorder %v996_v42, 2 }
   0x5   :  { %803 = vmatprep.mubr.bf16.mxu1 %v841_v10  ;;  %v843_v36 = vld [vmem:[%s1228_s0 + $0x18] sm:$0xff]   ;;  %v844_v37 = vld [vmem:[%s1228_s0 + $0x20] sm:$0xff]   ;;  %v845_v38 = vld [vmem:[%s1228_s0 + $0x28] sm:$0xff]  }
   0x6   :  { %768 = vmatmul.mubr.msk.bf16.vlgmr.msra.gmra.mrb[0].mxu0 %vm102_vm0, %v833_v2  ;;  %v846_v39 = vld [vmem:[%s1228_s0 + $0x30] sm:$0xff]   ;;  %v847_v40 = vld [vmem:[%s1228_s0 + $0x38] sm:$0xff]   ;;  %v739_v43 = vld [vmem:[%s1229_s3] ss:$0 sm:$0xff] }
   0x7   :  { %771 = vmatprep.mubr.msk.bf16.mxu0 %vm102_vm0, %v834_v3 }
   0xe   :  { %772 = vmatmul.mubr.msk.bf16.gmra.mrb[4].mxu0 %vm102_vm0, %v835_v4 }
   0xf   :  { %775 = vmatprep.mubr.msk.bf16.mxu0 %vm102_vm0, %v836_v5 }
  0x16   :  { %776 = vmatmul.mubr.msk.bf16.gmra.mrb[8].mxu0 %vm102_vm0, %v837_v6 }
  0x17   :  { %779 = vmatprep.mubr.msk.bf16.mxu0 %vm102_vm0, %v838_v7 }
  0x1e   :  { %780 = vmatmul.mubr.msk.bf16.gmra.mrb[12].mxu0 %vm102_vm0, %v839_v8 }
  0x1f   :  { %799 = vmatprep.mubr.bf16.mxu0 %v840_v9 }
  0xd9   :  { %v769_v11 = vpop.f32.mrb[0].mxu0 }
  0xda   :  { %v161_v12 = vpop.f32.mrb[1].mxu0 }
  0xdb   :  { %v770_v13 = vpop.f32.mrb[2].mxu0 }
  0xdc   :  { %v257_v14 = vpack.c.bf16 %v770_v13, %v769_v11  ;;  %v164_v15 = vpop.f32.mrb[3].mxu0 }
  0xdd   :  { %v256_v16 = vpack.c.bf16 %v164_v15, %v161_v12 }
  0xdf   :  { %783 = vmatprep.subr.bf16.mxu0 %v256_v16  ;;  %815 = vmatprep.subr.bf16.mxu1 %v256_v16 }
  0xe0   :  { %784 = vmatpush3.bf16.msra.mxu0 %v256_v16  ;;  %823 = vmatpush3.bf16.msra.mxu1 %v256_v16 }
  0xe1   :  { %v773_v17 = vpop.f32.mrb[4].mxu0  ;;  %785 = vmatprep.subr.bf16.mxu0 %v257_v14  ;;  %816 = vmatprep.subr.bf16.mxu1 %v257_v14 }
  0xe2   :  { %v177_v18 = vpop.f32.mrb[5].mxu0 }
  0xe3   :  { %v774_v19 = vpop.f32.mrb[6].mxu0 }
  0xe4   :  { %v259_v20 = vpack.c.bf16 %v774_v19, %v773_v17  ;;  %v180_v21 = vpop.f32.mrb[7].mxu0  ;;  %786 = vmatpush3.bf16.msra.mxu0 %v257_v14  ;;  %824 = vmatpush3.bf16.msra.mxu1 %v257_v14 }
  0xe5   :  { %v258_v22 = vpack.c.bf16 %v180_v21, %v177_v18 }
  0xe7   :  { %787 = vmatprep.subr.bf16.mxu0 %v258_v22  ;;  %817 = vmatprep.subr.bf16.mxu1 %v258_v22 }
  0xe8   :  { %788 = vmatpush3.bf16.msra.mxu0 %v258_v22  ;;  %825 = vmatpush3.bf16.msra.mxu1 %v258_v22 }
  0xe9   :  { %v777_v23 = vpop.f32.mrb[8].mxu0  ;;  %789 = vmatprep.subr.bf16.mxu0 %v259_v20  ;;  %818 = vmatprep.subr.bf16.mxu1 %v259_v20 }
  0xea   :  { %v193_v24 = vpop.f32.mrb[9].mxu0 }
  0xeb   :  { %v778_v25 = vpop.f32.mrb[10].mxu0 }
  0xec   :  { %v261_v26 = vpack.c.bf16 %v778_v25, %v777_v23  ;;  %v196_v27 = vpop.f32.mrb[11].mxu0  ;;  %790 = vmatpush3.bf16.msra.mxu0 %v259_v20  ;;  %826 = vmatpush3.bf16.msra.mxu1 %v259_v20 }
  0xed   :  { %v260_v28 = vpack.c.bf16 %v196_v27, %v193_v24 }
  0xef   :  { %791 = vmatprep.subr.bf16.mxu0 %v260_v28  ;;  %819 = vmatprep.subr.bf16.mxu1 %v260_v28 }
  0xf0   :  { %792 = vmatpush3.bf16.msra.mxu0 %v260_v28  ;;  %827 = vmatpush3.bf16.msra.mxu1 %v260_v28 }
  0xf1   :  { %v781_v29 = vpop.f32.mrb[12].mxu0  ;;  %793 = vmatprep.subr.bf16.mxu0 %v261_v26  ;;  %820 = vmatprep.subr.bf16.mxu1 %v261_v26 }
  0xf2   :  { %v209_v30 = vpop.f32.mrb[13].mxu0 }
  0xf3   :  { %v782_v31 = vpop.f32.mrb[14].mxu0 }
  0xf4   :  { %v263_v32 = vpack.c.bf16 %v782_v31, %v781_v29  ;;  %v212_v33 = vpop.f32.mrb[15].mxu0  ;;  %794 = vmatpush3.bf16.msra.mxu0 %v261_v26  ;;  %828 = vmatpush3.bf16.msra.mxu1 %v261_v26 }
  0xf5   :  { %v262_v34 = vpack.c.bf16 %v212_v33, %v209_v30 }
  0xf7   :  { %795 = vmatprep.subr.bf16.mxu0 %v262_v34  ;;  %821 = vmatprep.subr.bf16.mxu1 %v262_v34 }
  0xf8   :  { %796 = vmatpush3.bf16.msra.mxu0 %v262_v34  ;;  %829 = vmatpush3.bf16.msra.mxu1 %v262_v34 }
  0xf9   :  { %797 = vmatprep.subr.bf16.mxu0 %v263_v32  ;;  %822 = vmatprep.subr.bf16.mxu1 %v263_v32 }
  0xfc   :  { %798 = vmatpush3.bf16.msra.mxu0 %v263_v32  ;;  %830 = vmatpush3.bf16.msra.mxu1 %v263_v32 }
  0xff   :  { %800 = vmatmul.mubr.bf16.vlgmr.msra.gmra.mrb[16].mxu0 %v842_v35  ;;  %804 = vmatmul.mubr.bf16.vlgmr.msra.gmra.mrb[0].mxu1 %v843_v36 }
 0x100   :  { %807 = vmatprep.mubr.bf16.mxu1 %v844_v37 }
 0x107   :  { %808 = vmatmul.mubr.bf16.gmra.mrb[4].mxu1 %v845_v38 }
 0x108   :  { %811 = vmatprep.mubr.bf16.mxu1 %v846_v39 }
 0x10f   :  { %812 = vmatmul.mubr.bf16.gmra.mrb[8].mxu1 %v847_v40 }
 0x1d2   :  { %v801_v44 = vpop.f32.mrb[16].mxu0  ;;  %v805_v45 = vpop.f32.mrb[0].mxu1 }
 0x1d3   :  { %v469_v46 = vadd.f32 %v801_v44, %v739_v43  ;;  %v473_v47 = vadd.f32 %v805_v45, %v739_v43  ;;  %v346_v48 = vpop.f32.mrb[17].mxu0  ;;  %v362_v49 = vpop.f32.mrb[1].mxu1 }
 0x1d4   :  { %v802_v50 = vpop.f32.mrb[18].mxu0  ;;  %v806_v51 = vpop.f32.mrb[2].mxu1  ;;  %v467_v52 = vadd.f32 %v739_v43, %v346_v48  ;;  %v471_v58 = vadd.f32 %v739_v43, %v362_v49 }
 0x1d5   :  { %v470_v53 = vadd.f32 %v802_v50, %v739_v43  ;;  %v349_v54 = vpop.f32.mrb[19].mxu0  ;;  %v365_v55 = vpop.f32.mrb[3].mxu1  ;;  %v492_v56 = vsel %vm485_vm1, %v473_v47, -1e+30  ;;  %v488_v57 = vsel %vm485_vm1, %v469_v46, -1e+30  ;;  %v474_v59 = vadd.f32 %v806_v51, %v739_v43 }
 0x1d6   :  { %514 = vmax.xlane.f32.xlu0 %v492_v56  ;;  %506 = vmax.xlane.f32.xlu1 %v488_v57  ;;  %v486_v60 = vsel %vm485_vm1, %v467_v52, -1e+30  ;;  %v468_v1 = vadd.f32 %v739_v43, %v349_v54  ;;  %v472_v2 = vadd.f32 %v739_v43, %v365_v55  ;;  %v490_v3 = vsel %vm485_vm1, %v471_v58, -1e+30 }
 0x1d7   :  { %v489_v61 = vsel %vm485_vm1, %v470_v53, -1e+30  ;;  %v493_v4 = vsel %vm485_vm1, %v474_v59, -1e+30 }
 0x1d8   :  { %v491_v8 = vsel %vm485_vm1, %v472_v2, -1e+30  ;;  %v487_v9 = vsel %vm485_vm1, %v468_v1, -1e+30 }
 0x1da   :  { %502 = vmax.xlane.f32.xlu0 %v486_v60  ;;  %508 = vmax.xlane.f32.xlu1 %v489_v61  ;;  %v809_v62 = vpop.f32.mrb[4].mxu1 }
 0x1db   :  { %v378_v63 = vpop.f32.mrb[5].mxu1  ;;  %v477_v6 = vadd.f32 %v809_v62, %v739_v43 }
 0x1dc   :  { %v810_v0 = vpop.f32.mrb[6].mxu1  ;;  %v475_v15 = vadd.f32 %v739_v43, %v378_v63 }
 0x1dd   :  { %v381_v5 = vpop.f32.mrb[7].mxu1  ;;  %v478_v7 = vadd.f32 %v810_v0, %v739_v43  ;;  %v496_v12 = vsel %vm485_vm1, %v477_v6, -1e+30 }
 0x1de   :  { %510 = vmax.xlane.f32.xlu0 %v490_v3  ;;  %516 = vmax.xlane.f32.xlu1 %v493_v4  ;;  %v476_v16 = vadd.f32 %v739_v43, %v381_v5  ;;  %v494_v21 = vsel %vm485_vm1, %v475_v15, -1e+30 }
 0x1df   :  { %v497_v11 = vsel %vm485_vm1, %v478_v7, -1e+30 }
 0x1e0   :  { %v495_v20 = vsel %vm485_vm1, %v476_v16, -1e+30 }
 0x1e2   :  { %512 = vmax.xlane.f32.xlu1 %v491_v8  ;;  %504 = vmax.xlane.f32.xlu0 %v487_v9  ;;  %v813_v10 = vpop.f32.mrb[8].mxu1 }
 0x1e3   :  { %v394_v13 = vpop.f32.mrb[9].mxu1  ;;  %v481_v24 = vadd.f32 %v813_v10, %v739_v43 }
 0x1e4   :  { %v814_v14 = vpop.f32.mrb[10].mxu1  ;;  %v479_v18 = vadd.f32 %v739_v43, %v394_v13 }
 0x1e5   :  { %v397_v17 = vpop.f32.mrb[11].mxu1  ;;  %v482_v25 = vadd.f32 %v814_v14, %v739_v43  ;;  %v1042_v27 = vsel %vm485_vm1, %v481_v24, -1e+30 }
 0x1e6   :  { %524 = vmax.xlane.f32.xlu1 %v497_v11  ;;  %522 = vmax.xlane.f32.xlu0 %v496_v12  ;;  %v480_v19 = vadd.f32 %v739_v43, %v397_v17  ;;  %v1032_v23 = vsel %vm485_vm1, %v479_v18, -1e+30 }
 0x1e7   :  { %v1038_v26 = vsel %vm485_vm1, %v482_v25, -1e+30 }
 0x1e8   :  { %v1028_v22 = vsel %vm485_vm1, %v480_v19, -1e+30 }
 0x1ea   :  { %520 = vmax.xlane.f32.xlu1 %v495_v20  ;;  %518 = vmax.xlane.f32.xlu0 %v494_v21 }
 0x1ee   :  { %528 = vmax.xlane.f32.xlu1 %v1028_v22  ;;  %526 = vmax.xlane.f32.xlu0 %v1032_v23 }
 0x1f2   :  { %532 = vmax.xlane.f32.xlu1 %v1038_v26  ;;  %530 = vmax.xlane.f32.xlu0 %v1042_v27 }
 0x263   :  { %v515_v28 = vpop.xlane.xlu0 %514  ;;  %v507_v29 = vpop.xlane.xlu1 %506 }
 0x264   :  { %v1046_v30 = vsub.f32 %v492_v56, %v515_v28  ;;  %v1048_v31 = vsub.f32 %v488_v57, %v507_v29 }
 0x266   :  { %v554_v32 = vmul.f32 1.442695, %v1048_v31  ;;  %v562_v33 = vmul.f32 1.442695, %v1046_v30 }
 0x267   :  { %v503_v34 = vpop.xlane.xlu0 %502  ;;  %v509_v35 = vpop.xlane.xlu1 %508 }
 0x268   :  { %v1052_v36 = vsub.f32 %v486_v60, %v503_v34  ;;  %v1054_v37 = vsub.f32 %v489_v61, %v509_v35  ;;  %848 = vpow2.f32 %v554_v32 }
 0x269   :  { %850 = vpow2.f32 %v562_v33 }
 0x26a   :  { %v556_v38 = vmul.f32 1.442695, %v1054_v37  ;;  %v550_v39 = vmul.f32 1.442695, %v1052_v36 }
 0x26b   :  { %v511_v40 = vpop.xlane.xlu0 %510  ;;  %v517_v41 = vpop.xlane.xlu1 %516 }
 0x26c   :  { %v1058_v43 = vsub.f32 %v490_v3, %v511_v40  ;;  %v1060_v44 = vsub.f32 %v493_v4, %v517_v41  ;;  %852 = vpow2.f32 %v556_v38 }
 0x26d   :  { %854 = vpow2.f32 %v550_v39 }
 0x26e   :  { %v564_v45 = vmul.f32 1.442695, %v1060_v44  ;;  %v558_v46 = vmul.f32 1.442695, %v1058_v43 }
 0x26f   :  { %v513_v47 = vpop.xlane.xlu1 %512  ;;  %v505_v48 = vpop.xlane.xlu0 %504 }
 0x270   :  { %v1064_v49 = vsub.f32 %v491_v8, %v513_v47  ;;  %v1066_v50 = vsub.f32 %v487_v9, %v505_v48  ;;  %856 = vpow2.f32 %v564_v45 }
 0x271   :  { %858 = vpow2.f32 %v558_v46 }
 0x272   :  { %v552_v51 = vmul.f32 1.442695, %v1066_v50  ;;  %v849_v52 = vpop.eup %848  ;;  %v560_v53 = vmul.f32 1.442695, %v1064_v49 }
 0x273   :  { %v525_v54 = vpop.xlane.xlu1 %524  ;;  %v523_v55 = vpop.xlane.xlu0 %522  ;;  %v584_v58 = vsel %vm485_vm1, %v849_v52, 0.0 }
 0x274   :  { %v1070_v56 = vsub.f32 %v497_v11, %v525_v54  ;;  %v1072_v57 = vsub.f32 %v496_v12, %v523_v55  ;;  %v851_v59 = vpop.eup %850  ;;  %860 = vpow2.f32 %v552_v51  ;;  %602 = vadd.xlane.f32.xlu0 %v584_v58 }
 0x275   :  { %862 = vpow2.f32 %v560_v53  ;;  %v588_v4 = vsel %vm485_vm1, %v851_v59, 0.0 }
 0x276   :  { %v570_v60 = vmul.f32 1.442695, %v1072_v57  ;;  %v853_v61 = vpop.eup %852  ;;  %v572_v62 = vmul.f32 1.442695, %v1070_v56 }
 0x277   :  { %v521_v63 = vpop.xlane.xlu1 %520  ;;  %v519_v0 = vpop.xlane.xlu0 %518  ;;  %v585_v3 = vsel %vm485_vm1, %v853_v61, 0.0 }
 0x278   :  { %v1078_v1 = vsub.f32 %v495_v20, %v521_v63  ;;  %v1080_v2 = vsub.f32 %v494_v21, %v519_v0  ;;  %v855_v5 = vpop.eup %854  ;;  %864 = vpow2.f32 %v570_v60  ;;  %604 = vadd.xlane.f32.xlu1 %v585_v3  ;;  %610 = vadd.xlane.f32.xlu0 %v588_v4 }
 0x279   :  { %866 = vpow2.f32 %v572_v62  ;;  %v582_v14 = vsel %vm485_vm1, %v855_v5, 0.0 }
 0x27a   :  { %v566_v6 = vmul.f32 1.442695, %v1080_v2  ;;  %v857_v7 = vpop.eup %856  ;;  %v568_v8 = vmul.f32 1.442695, %v1078_v1 }
 0x27b   :  { %v529_v9 = vpop.xlane.xlu1 %528  ;;  %v527_v10 = vpop.xlane.xlu0 %526  ;;  %v589_v13 = vsel %vm485_vm1, %v857_v7, 0.0 }
 0x27c   :  { %v1089_v11 = vsub.f32 %v1028_v22, %v529_v9  ;;  %v1092_v12 = vsub.f32 %v1032_v23, %v527_v10  ;;  %v859_v15 = vpop.eup %858  ;;  %868 = vpow2.f32 %v566_v6  ;;  %612 = vadd.xlane.f32.xlu1 %v589_v13  ;;  %598 = vadd.xlane.f32.xlu0 %v582_v14 }
 0x27d   :  { %870 = vpow2.f32 %v568_v8  ;;  %v586_v23 = vsel %vm485_vm1, %v859_v15, 0.0 }
 0x27e   :  { %v574_v16 = vmul.f32 1.442695, %v1092_v12  ;;  %v861_v17 = vpop.eup %860  ;;  %v576_v18 = vmul.f32 1.442695, %v1089_v11 }
 0x27f   :  { %v533_v19 = vpop.xlane.xlu1 %532  ;;  %v531_v20 = vpop.xlane.xlu0 %530  ;;  %v583_v24 = vsel %vm485_vm1, %v861_v17, 0.0 }
 0x280   :  { %v1101_v21 = vsub.f32 %v1038_v26, %v533_v19  ;;  %v1104_v22 = vsub.f32 %v1042_v27, %v531_v20  ;;  %v863_v25 = vpop.eup %862  ;;  %872 = vpow2.f32 %v574_v16  ;;  %606 = vadd.xlane.f32.xlu0 %v586_v23  ;;  %600 = vadd.xlane.f32.xlu1 %v583_v24 }
 0x281   :  { %874 = vpow2.f32 %v576_v18  ;;  %v587_v27 = vsel %vm485_vm1, %v863_v25, 0.0 }
 0x282   :  { %v578_v28 = vmul.f32 1.442695, %v1104_v22  ;;  %v865_v29 = vpop.eup %864  ;;  %v580_v26 = vmul.f32 1.442695, %v1101_v21 }
 0x283   :  { %v592_v32 = vsel %vm485_vm1, %v865_v29, 0.0  ;;  %v867_v33 = vpop.eup %866 }
 0x284   :  { %876 = vpow2.f32 %v578_v28  ;;  %608 = vadd.xlane.f32.xlu1 %v587_v27  ;;  %618 = vadd.xlane.f32.xlu0 %v592_v32  ;;  %v593_v35 = vsel %vm485_vm1, %v867_v33, 0.0 }
 0x285   :  { %878 = vpow2.f32 %v580_v26 }
 0x286   :  { %v869_v34 = vpop.eup %868 }
 0x287   :  { %v590_v38 = vsel %vm485_vm1, %v869_v34, 0.0  ;;  %v871_v39 = vpop.eup %870 }
 0x288   :  { %620 = vadd.xlane.f32.xlu1 %v593_v35  ;;  %614 = vadd.xlane.f32.xlu0 %v590_v38  ;;  %v591_v41 = vsel %vm485_vm1, %v871_v39, 0.0 }
 0x28a   :  { %v873_v40 = vpop.eup %872 }
 0x28b   :  { %v594_v45 = vsel %vm485_vm1, %v873_v40, 0.0  ;;  %v875_v46 = vpop.eup %874 }
 0x28c   :  { %616 = vadd.xlane.f32.xlu1 %v591_v41  ;;  %622 = vadd.xlane.f32.xlu0 %v594_v45  ;;  %v595_v48 = vsel %vm485_vm1, %v875_v46, 0.0 }
 0x28e   :  { %v877_v47 = vpop.eup %876 }
 0x28f   :  { %v596_v51 = vsel %vm485_vm1, %v877_v47, 0.0  ;;  %v879_v52 = vpop.eup %878 }
 0x290   :  { %624 = vadd.xlane.f32.xlu1 %v595_v48  ;;  %626 = vadd.xlane.f32.xlu0 %v596_v51  ;;  %v597_v53 = vsel %vm485_vm1, %v879_v52, 0.0 }
 0x294   :  { %628 = vadd.xlane.f32.xlu1 %v597_v53 }
 0x301   :  { %v603_v54 = vpop.xlane.xlu0 %602 }
 0x302   :  { %880 = vlog2.f32 %v603_v54 }
 0x305   :  { %v605_v55 = vpop.xlane.xlu1 %604  ;;  %v611_v58 = vpop.xlane.xlu0 %610 }
 0x306   :  { %882 = vlog2.f32 %v605_v55 }
 0x307   :  { %884 = vlog2.f32 %v611_v58 }
 0x309   :  { %v613_v59 = vpop.xlane.xlu1 %612  ;;  %v599_v60 = vpop.xlane.xlu0 %598 }
 0x30a   :  { %886 = vlog2.f32 %v613_v59 }
 0x30b   :  { %888 = vlog2.f32 %v599_v60 }
 0x30c   :  { %v881_v61 = vpop.eup %880 }
 0x30d   :  { %v635_v62 = vmul.f32 0.6931472, %v881_v61  ;;  %v601_v63 = vpop.xlane.xlu1 %600  ;;  %v607_v0 = vpop.xlane.xlu0 %606 }
 0x30e   :  { %890 = vlog2.f32 %v601_v63 }
 0x30f   :  { %v664_v3 = vsub.f32 %v1048_v31, %v635_v62  ;;  %892 = vlog2.f32 %v607_v0 }
 0x310   :  { %v883_v4 = vpop.eup %882 }
 0x311   :  { %v885_v5 = vpop.eup %884  ;;  %v680_v6 = vsel %vm485_vm1, %v664_v3, 0.0  ;;  %v637_v7 = vmul.f32 0.6931472, %v883_v4  ;;  %v609_v8 = vpop.xlane.xlu1 %608 }
 0x312   :  { %v619_v9 = vpop.xlane.xlu0 %618  ;;  %696 = vst [vmem:[%s1230_s4 + $0x10] sm:$0xff] %v680_v6  ;;  %v643_v10 = vmul.f32 0.6931472, %v885_v5  ;;  %894 = vlog2.f32 %v609_v8 }
 0x313   :  { %v665_v13 = vsub.f32 %v1054_v37, %v637_v7  ;;  %896 = vlog2.f32 %v619_v9 }
 0x314   :  { %v887_v14 = vpop.eup %886  ;;  %v668_v31 = vsub.f32 %v1046_v30, %v643_v10 }
 0x315   :  { %v889_v15 = vpop.eup %888  ;;  %v681_v16 = vsel %vm485_vm1, %v665_v13, 0.0  ;;  %v645_v17 = vmul.f32 0.6931472, %v887_v14  ;;  %v621_v18 = vpop.xlane.xlu1 %620 }
 0x316   :  { %v615_v19 = vpop.xlane.xlu0 %614  ;;  %697 = vst [vmem:[%s1230_s4 + $0x18] sm:$0xff] %v681_v16  ;;  %v684_v20 = vsel %vm485_vm1, %v668_v31, 0.0  ;;  %v631_v23 = vmul.f32 0.6931472, %v889_v15  ;;  %898 = vlog2.f32 %v621_v18 }
 0x317   :  { %700 = vst [vmem:[%s1230_s4 + $0x30] sm:$0xff] %v684_v20  ;;  %v669_v30 = vsub.f32 %v1060_v44, %v645_v17  ;;  %900 = vlog2.f32 %v615_v19 }
 0x318   :  { %v891_v37 = vpop.eup %890  ;;  %v662_v24 = vsub.f32 %v1052_v36, %v631_v23 }
 0x319   :  { %v893_v25 = vpop.eup %892  ;;  %v685_v28 = vsel %vm485_vm1, %v669_v30, 0.0  ;;  %v633_v29 = vmul.f32 0.6931472, %v891_v37  ;;  %v617_v26 = vpop.xlane.xlu1 %616 }
 0x31a   :  { %v623_v27 = vpop.xlane.xlu0 %622  ;;  %701 = vst [vmem:[%s1230_s4 + $0x38] sm:$0xff] %v685_v28  ;;  %v678_v32 = vsel %vm485_vm1, %v662_v24, 0.0  ;;  %v639_v33 = vmul.f32 0.6931472, %v893_v25  ;;  %902 = vlog2.f32 %v617_v26 }
 0x31b   :  { %694 = vst [vmem:[%s1230_s4] sm:$0xff] %v678_v32  ;;  %v663_v36 = vsub.f32 %v1066_v50, %v633_v29  ;;  %904 = vlog2.f32 %v623_v27 }
 0x31c   :  { %v895_v44 = vpop.eup %894  ;;  %v666_v34 = vsub.f32 %v1058_v43, %v639_v33 }
 0x31d   :  { %v897_v35 = vpop.eup %896  ;;  %v679_v38 = vsel %vm485_vm1, %v663_v36, 0.0  ;;  %v641_v39 = vmul.f32 0.6931472, %v895_v44  ;;  %v625_v40 = vpop.xlane.xlu1 %624 }
 0x31e   :  { %v627_v41 = vpop.xlane.xlu0 %626  ;;  %695 = vst [vmem:[%s1230_s4 + $0x8] sm:$0xff] %v679_v38  ;;  %v682_v45 = vsel %vm485_vm1, %v666_v34, 0.0  ;;  %v651_v46 = vmul.f32 0.6931472, %v897_v35  ;;  %906 = vlog2.f32 %v625_v40 }
 0x31f   :  { %698 = vst [vmem:[%s1230_s4 + $0x20] sm:$0xff] %v682_v45  ;;  %v667_v43 = vsub.f32 %v1064_v49, %v641_v39  ;;  %908 = vlog2.f32 %v627_v41 }
 0x320   :  { %v899_v50 = vpop.eup %898  ;;  %v672_v47 = vsub.f32 %v1072_v57, %v651_v46 }
 0x321   :  { %v901_v48 = vpop.eup %900  ;;  %v683_v51 = vsel %vm485_vm1, %v667_v43, 0.0  ;;  %v653_v52 = vmul.f32 0.6931472, %v899_v50  ;;  %v629_v53 = vpop.xlane.xlu1 %628 }
 0x322   :  { %699 = vst [vmem:[%s1230_s4 + $0x28] sm:$0xff] %v683_v51  ;;  %v688_v54 = vsel %vm485_vm1, %v672_v47, 0.0  ;;  %v647_v55 = vmul.f32 0.6931472, %v901_v48  ;;  %910 = vlog2.f32 %v629_v53 }
 0x323   :  { %704 = vst [vmem:[%s1230_s4 + $0x50] sm:$0xff] %v688_v54  ;;  %v673_v49 = vsub.f32 %v1070_v56, %v653_v52 }
 0x324   :  { %v903_v57 = vpop.eup %902  ;;  %v670_v58 = vsub.f32 %v1080_v2, %v647_v55 }
 0x325   :  { %v905_v59 = vpop.eup %904  ;;  %v689_v60 = vsel %vm485_vm1, %v673_v49, 0.0  ;;  %v649_v61 = vmul.f32 0.6931472, %v903_v57 }
 0x326   :  { %705 = vst [vmem:[%s1230_s4 + $0x58] sm:$0xff] %v689_v60  ;;  %v686_v62 = vsel %vm485_vm1, %v670_v58, 0.0  ;;  %v655_v63 = vmul.f32 0.6931472, %v905_v59 }
 0x327   :  { %702 = vst [vmem:[%s1230_s4 + $0x40] sm:$0xff] %v686_v62  ;;  %v671_v56 = vsub.f32 %v1078_v1, %v649_v61 }
 0x328   :  { %v907_v2 = vpop.eup %906  ;;  %v674_v0 = vsub.f32 %v1092_v12, %v655_v63 }
 0x329   :  { %v909_v3 = vpop.eup %908  ;;  %v687_v4 = vsel %vm485_vm1, %v671_v56, 0.0  ;;  %v657_v5 = vmul.f32 0.6931472, %v907_v2 }
 0x32a   :  { %703 = vst [vmem:[%s1230_s4 + $0x48] sm:$0xff] %v687_v4  ;;  %v690_v6 = vsel %vm485_vm1, %v674_v0, 0.0  ;;  %v659_v7 = vmul.f32 0.6931472, %v909_v3 }
 0x32b   :  { %706 = vst [vmem:[%s1230_s4 + $0x60] sm:$0xff] %v690_v6  ;;  %v675_v1 = vsub.f32 %v1089_v11, %v657_v5 }
 0x32c   :  { %v911_v12 = vpop.eup %910  ;;  %v676_v8 = vsub.f32 %v1104_v22, %v659_v7 }
 0x32d   :  { %v691_v9 = vsel %vm485_vm1, %v675_v1, 0.0  ;;  %v661_v10 = vmul.f32 0.6931472, %v911_v12 }
 0x32e   :  { %707 = vst [vmem:[%s1230_s4 + $0x68] sm:$0xff] %v691_v9  ;;  %v692_v13 = vsel %vm485_vm1, %v676_v8, 0.0 }
 0x32f   :  { %708 = vst [vmem:[%s1230_s4 + $0x70] sm:$0xff] %v692_v13  ;;  %v677_v11 = vsub.f32 %v1101_v21, %v661_v10 }
 0x331   :  { %v693_v22 = vsel %vm485_vm1, %v677_v11, 0.0 }
 0x332   :  { %709 = vst [vmem:[%s1230_s4 + $0x78] sm:$0xff] %v693_v22 }

</bundles_post_ra>
